<compile_context>
chip_gen: v5e
topology: v5e:2x2
jax: 0.10.0
libtpu: 0.0.40
codegen_flags: <defaults>
</compile_context>

<pallas_src>
import functools
import numbers

import jax
import jax.numpy as jnp
from jax.experimental import pallas as pl
from jax.experimental.pallas import tpu as pltpu


_MXU_MAX_DIM = 512  # use banded reflect-blur matrices on the MXU up to this H / W


def _gaussian_kernel1d(kernel_size: int, sigma) -> jnp.ndarray:
    ksize_half = (kernel_size - 1) * 0.5
    x = jnp.linspace(-ksize_half, ksize_half, kernel_size, dtype=jnp.float32)
    pdf = jnp.exp(-0.5 * (x / sigma) ** 2)
    return pdf / jnp.sum(pdf)


def _reflect_blur_matrix(n: int, k1d: jnp.ndarray) -> jnp.ndarray:
    """(n, n) matrix M with M[i, j] = sum_k w[k] * [reflect(i + k - pad) == j].

    Applying M from the left == 1D gaussian blur with torchvision 'reflect'
    padding (no edge repeat) along that axis.  Built once in the wrapper (tiny).
    """
    K = int(k1d.shape[0])
    pad = K // 2
    pos = jnp.arange(n)[:, None] + jnp.arange(K)[None, :] - pad      # (n, K)
    pos = jnp.abs(pos)                                               # reflect left edge
    pos = jnp.where(pos >= n, 2 * (n - 1) - pos, pos)                # reflect right edge
    onehot = jax.nn.one_hot(pos, n, dtype=jnp.float32)               # (n, K, n)
    return jnp.einsum('nkj,k->nj', onehot, k1d.astype(jnp.float32))  # (n, n)


# ----------------------------- kernels ---------------------------------------


def _blur_mxu_kernel(my_ref, mxt_ref, x_ref, o_ref, *, out_is_int: bool):
    """Small/medium planes: both separable passes as batched MXU matmuls.

    my_ref  : VMEM (H, H)  vertical reflect-blur matrix
    mxt_ref : VMEM (W, W)  horizontal reflect-blur matrix, pre-transposed
    x_ref   : VMEM (TB, H, W) plane block
    o_ref   : VMEM (TB, H, W) blurred output block
    """
    TB, H, W = o_ref.shape
    xf = x_ref[...].astype(jnp.float32)                      # cast once per block
    my_b = jnp.broadcast_to(my_ref[...], (TB, H, H))
    mxt_b = jnp.broadcast_to(mxt_ref[...], (TB, W, W))
    # Vertical pass: rows mixed by the banded (H, H) matrix (reflect pad folded in).
    t = jnp.einsum('bij,bjw->biw', my_b, xf, preferred_element_type=jnp.float32)
    # Horizontal pass: columns mixed by the banded (W, W) matrix (pre-transposed).
    r = jnp.einsum('bhw,bwv->bhv', t, mxt_b, preferred_element_type=jnp.float32)
    if out_is_int:
        r = jnp.round(r)                                      # torchvision int rounding
    o_ref[...] = r.astype(o_ref.dtype)


def _blur_taps_kernel(wy_ref, wx_ref, x_ref, o_ref, *,
                      ky: int, kx: int, pad_y: int, pad_x: int, out_is_int: bool):
    """Fallback for large planes: separable shift/accumulate taps.

    Reflect padding is built as *values* (no VMEM scratch round trips); only the
    final output block is stored.
    wy_ref/wx_ref : SMEM (Ky,)/(Kx,) f32 separable gaussian weights.
    """
    TB, H, W = o_ref.shape
    xf = x_ref[...].astype(jnp.float32)                       # cast once per block

    # Vertical reflect pad as a value, then Ky sublane-offset taps.
    if pad_y:
        tops = [xf[:, pad_y - p:pad_y - p + 1, :] for p in range(pad_y)]
        bots = [xf[:, H - 2 - p:H - 1 - p, :] for p in range(pad_y)]
        vp = jnp.concatenate(tops + [xf] + bots, axis=1)      # (TB, H + 2*pad_y, W)
    else:
        vp = xf
    yv = wy_ref[0] * vp[:, 0:H, :]
    for k in range(1, ky):
        yv = yv + wy_ref[k] * vp[:, k:k + H, :]

    # Horizontal reflect pad as a value, then Kx lane-offset taps.
    if pad_x:
        lefts = [yv[:, :, pad_x - p:pad_x - p + 1] for p in range(pad_x)]
        rights = [yv[:, :, W - 2 - p:W - 1 - p] for p in range(pad_x)]
        hp = jnp.concatenate(lefts + [yv] + rights, axis=2)   # (TB, H, W + 2*pad_x)
    else:
        hp = yv
    acc = wx_ref[0] * hp[:, :, 0:W]
    for k in range(1, kx):
        acc = acc + wx_ref[k] * hp[:, :, k:k + W]

    if out_is_int:
        acc = jnp.round(acc)
    o_ref[...] = acc.astype(o_ref.dtype)


# --------------------------- sizing helpers -----------------------------------


def _vmem_budget_bytes() -> int:
    """~75% of per-core VMEM; falls back to the v7x minimum (64 MiB) if unknown."""
    cap = 64 << 20
    try:
        info = pltpu.get_tpu_info()
        cap = int(getattr(info, "vmem_capacity_bytes", cap) or cap)
    except Exception:
        pass
    return int(cap * 3 // 4)


def _pick_plane_block(nc: int, h: int, w: int, in_itemsize: int, out_itemsize: int,
                      tmp_bytes_per_plane: int, fixed_bytes: int,
                      vmem_budget: int) -> int:
    """Planes per grid step: as big as VMEM allows, ~8 MiB f32 data per step,
    while keeping >= 2 grid steps (v7x 2-TC split) and >= 4 when NC allows."""
    plane = h * w
    per_plane = plane * (2 * in_itemsize + 2 * out_itemsize) + tmp_bytes_per_plane
    avail = max(vmem_budget - fixed_bytes, per_plane)
    tb = max(1, avail // per_plane)
    tb = min(tb, max(1, (8 << 20) // max(plane * 4, 1)))   # ~8 MiB f32 per step
    tb = min(tb, nc)
    if nc >= 2:
        tb = min(tb, -(-nc // 2))
    if nc >= 8:
        tb = min(tb, -(-nc // 4))
    return int(max(1, tb))


# ------------------------------ wrapper ----------------------------------------


def gaussian_blur(img: jnp.ndarray, kernel_size, sigma, use_mxu=None) -> jnp.ndarray:
    """img: [..., H, W] (typically N, C, H, W). kernel_size: (ky, kx) odd ints.
    sigma: scalar (traced ok)."""
    ky, kx = int(kernel_size[0]), int(kernel_size[1])
    pad_y, pad_x = ky // 2, kx // 2

    orig_shape = img.shape
    H, W = int(orig_shape[-2]), int(orig_shape[-1])
    if H <= pad_y or W <= pad_x:
        raise ValueError("kernel_size too large for reflect padding of this image")

    x = img.reshape(-1, H, W)                 # flatten all leading dims (N*C planes)
    NC = x.shape[0]
    dtype = img.dtype
    out_is_int = bool(jnp.issubdtype(dtype, jnp.integer))
    itemsize = int(x.dtype.itemsize)

    # Separable gaussian weights (runtime values: sigma may be traced).
    k1d_y = _gaussian_kernel1d(ky, sigma)
    k1d_x = _gaussian_kernel1d(kx, sigma)

    if use_mxu is None:
        use_mxu = (H <= _MXU_MAX_DIM) and (W <= _MXU_MAX_DIM)

    vmem_budget = _vmem_budget_bytes()
    compiler_params = pltpu.CompilerParams(
        dimension_semantics=("parallel",),
        vmem_limit_bytes=int(vmem_budget),
    )

    if use_mxu:
        my = _reflect_blur_matrix(H, k1d_y)           # (H, H)
        mxt = _reflect_blur_matrix(W, k1d_x).T        # (W, W), pre-transposed
        fixed = 2 * (H * H + W * W) * 4               # double-buffered matrix blocks
        tmp_per_plane = 3 * H * W * 4 + (H * H + W * W) * 4   # xf/t/r + broadcasts
        TB = _pick_plane_block(NC, H, W, itemsize, itemsize,
                               tmp_per_plane, fixed, vmem_budget)
        kern = functools.partial(_blur_mxu_kernel, out_is_int=out_is_int)
        out = pl.pallas_call(
            kern,
            out_shape=jax.ShapeDtypeStruct((NC, H, W), dtype),
            grid=(pl.cdiv(NC, TB),),
            in_specs=[
                pl.BlockSpec((H, H), lambda i: (0, 0)),        # My (fetched once)
                pl.BlockSpec((W, W), lambda i: (0, 0)),        # Mx^T (fetched once)
                pl.BlockSpec((TB, H, W), lambda i: (i, 0, 0)),  # TB planes / step
            ],
            out_specs=pl.BlockSpec((TB, H, W), lambda i: (i, 0, 0)),
            compiler_params=compiler_params,
        )(my, mxt, x)
    else:
        # TODO(synk): add an H grid axis with a 2*pad_y row halo (pl.ANY input +
        #             manual pltpu.make_async_copy) so planes larger than a VMEM
        #             block (e.g. 4Kx4K f32 on v7x) also run.
        tmp_per_plane = 6 * H * W * 4                 # xf, padded values, taps, acc
        TB = _pick_plane_block(NC, H, W, itemsize, itemsize,
                               tmp_per_plane, 0, vmem_budget)
        kern = functools.partial(_blur_taps_kernel, ky=ky, kx=kx,
                                 pad_y=pad_y, pad_x=pad_x, out_is_int=out_is_int)
        out = pl.pallas_call(
            kern,
            out_shape=jax.ShapeDtypeStruct((NC, H, W), dtype),
            grid=(pl.cdiv(NC, TB),),
            in_specs=[
                pl.BlockSpec(memory_space=pltpu.MemorySpace.SMEM),   # (Ky,) weights
                pl.BlockSpec(memory_space=pltpu.MemorySpace.SMEM),   # (Kx,) weights
                pl.BlockSpec((TB, H, W), lambda i: (i, 0, 0)),
            ],
            out_specs=pl.BlockSpec((TB, H, W), lambda i: (i, 0, 0)),
            compiler_params=compiler_params,
        )(k1d_y, k1d_x, x)

    return out.reshape(orig_shape)


class GaussianBlurPallas:
    """Mirror of the PyTorch GaussianBlur module (forward pass only)."""

    def __init__(self, kernel_size, sigma=(0.1, 2.0)):
        if isinstance(kernel_size, numbers.Number):
            kernel_size = (int(kernel_size), int(kernel_size))
        elif len(kernel_size) == 1:
            kernel_size = (int(kernel_size[0]), int(kernel_size[0]))
        kernel_size = tuple(int(k) for k in kernel_size)
        if len(kernel_size) != 2:
            raise ValueError("Kernel size should be a tuple/list of two integers")
        for ks in kernel_size:
            if ks <= 0 or ks % 2 == 0:
                raise ValueError("Kernel size value should be an odd and positive number.")
        self.kernel_size = kernel_size

        if isinstance(sigma, numbers.Number):
            if sigma <= 0:
                raise ValueError("If sigma is a single number, it must be positive.")
            sigma = (float(sigma), float(sigma))
        else:
            sigma = (float(sigma[0]), float(sigma[1]))
            if not 0.0 < sigma[0] <= sigma[1]:
                raise ValueError("sigma values should be positive and of the form (min, max).")
        self.sigma = sigma

    def __call__(self, img: jnp.ndarray, key: jax.Array) -> jnp.ndarray:
        # get_params: sigma ~ U(sigma_min, sigma_max); torch uses the global RNG,
        # here we draw deterministically from an explicit key.
        sigma = jax.random.uniform(
            key, (), minval=self.sigma[0], maxval=self.sigma[1], dtype=jnp.float32
        )
        return gaussian_blur(img, self.kernel_size, sigma)


def _reference_blur(img, kernel_size, sigma):
    """Pure-JAX dense Ky*Kx reference (for correctness checks only)."""
    ky, kx = kernel_size
    k2d = _gaussian_kernel1d(ky, sigma)[:, None] * _gaussian_kernel1d(kx, sigma)[None, :]
    py, px = ky // 2, kx // 2
    H, W = img.shape[-2], img.shape[-1]
    x = img.reshape(-1, H, W).astype(jnp.float32)
    xp = jnp.pad(x, ((0, 0), (py, py), (px, px)), mode="reflect")
    out = jnp.zeros_like(x)
    for i in range(ky):
        for j in range(kx):
            out = out + k2d[i, j] * xp[:, i:i + H, j:j + W]
    if jnp.issubdtype(img.dtype, jnp.integer):
        out = jnp.round(out)
    return out.reshape(img.shape).astype(img.dtype)


if __name__ == "__main__":
    key = jax.random.PRNGKey(0)
    k_img, k_sigma = jax.random.split(key)

    # Small deterministic input consistent with [..., C, H, W]: (N=2, C=4, H=16, W=16)
    img = jax.random.uniform(k_img, (2, 4, 16, 16), dtype=jnp.float32)

    blur = GaussianBlurPallas(kernel_size=5, sigma=(0.1, 2.0))
    out = jax.block_until_ready(blur(img, k_sigma))
    assert out.shape == img.shape and out.dtype == img.dtype
    assert bool(jnp.all(jnp.isfinite(out)))

    # Same sigma draw as inside __call__.
    sigma = jax.random.uniform(k_sigma, (), minval=0.1, maxval=2.0, dtype=jnp.float32)
    ref = _reference_blur(img, (5, 5), sigma)
    # MXU path: depending on generation, f32 matmul operands may be routed through
    # bf16 passes; keep a blur-appropriate tolerance here (strict check is below
    # on the pure-f32 tap path).
    assert bool(jnp.allclose(out, ref, atol=5e-3, rtol=0.0))

    # Tap (shift/accumulate) fallback path, forced at the same shape: strict check.
    out_taps = jax.block_until_ready(gaussian_blur(img, (5, 5), sigma, use_mxu=False))
    assert bool(jnp.allclose(out_taps, ref, atol=1e-5, rtol=1e-5))

    # Ragged grid: NC=10 planes -> TB=3 -> 4 grid steps with a partial last block,
    # plus an asymmetric kernel (ky=3, kx=5).
    img2 = jax.random.uniform(k_img, (1, 10, 16, 16), dtype=jnp.float32)
    out2 = jax.block_until_ready(gaussian_blur(img2, (3, 5), sigma))
    ref2 = _reference_blur(img2, (3, 5), sigma)
    assert out2.shape == img2.shape
    assert bool(jnp.allclose(out2, ref2, atol=5e-3, rtol=0.0))

    print("KERNEL_OK")
</pallas_src>

<mosaic_0001>
module attributes {stable_mosaic.version = 11 : i64} {
  func.func @_blur_mxu_kernel(%arg0: i32, %arg1: memref<16x16xf32, #tpu.memory_space<vmem>>, %arg2: memref<16x16xf32, #tpu.memory_space<vmem>>, %arg3: memref<2x16x16xf32, #tpu.memory_space<vmem>>, %arg4: memref<2x16x16xf32, #tpu.memory_space<vmem>>) attributes {dimension_semantics = [#tpu.dimension_semantics<parallel>], iteration_bounds = array<i64: 4>, scalar_prefetch = 0 : i64, scratch_operands = 0 : i64, tpu.core_type = #tpu.core_type<tc>, window_params = [{pipeline_mode = #tpu.pipeline_mode<synchronous>, transform_indices = @transform_0, window_bounds = array<i64: 16, 16>}, {pipeline_mode = #tpu.pipeline_mode<synchronous>, transform_indices = @transform_1, window_bounds = array<i64: 16, 16>}, {transform_indices = @transform_2, window_bounds = array<i64: 2, 16, 16>}, {transform_indices = @transform_3, window_bounds = array<i64: 2, 16, 16>}]} {
    %c0 = arith.constant 0 : index
    %c0_0 = arith.constant 0 : index
    %c0_1 = arith.constant 0 : index
    %0 = vector.load %arg3[%c0, %c0_0, %c0_1] : memref<2x16x16xf32, #tpu.memory_space<vmem>>, vector<2x16x16xf32>
    %c0_2 = arith.constant 0 : index
    %c0_3 = arith.constant 0 : index
    %1 = vector.load %arg1[%c0_2, %c0_3] : memref<16x16xf32, #tpu.memory_space<vmem>>, vector<16x16xf32>
    %2 = vector.shape_cast %1 : vector<16x16xf32> to vector<1x16x16xf32>
    %3 = vector.broadcast %2 : vector<1x16x16xf32> to vector<2x16x16xf32>
    %c0_4 = arith.constant 0 : index
    %c0_5 = arith.constant 0 : index
    %4 = vector.load %arg2[%c0_4, %c0_5] : memref<16x16xf32, #tpu.memory_space<vmem>>, vector<16x16xf32>
    %5 = vector.shape_cast %4 : vector<16x16xf32> to vector<1x16x16xf32>
    %6 = vector.broadcast %5 : vector<1x16x16xf32> to vector<2x16x16xf32>
    "tpu.trace_start"() <{level = 10 : i32, message = "bij,bjw->biw"}> : () -> ()
    %cst = arith.constant dense<0.000000e+00> : vector<2x16x16xf32>
    %7 = tpu.matmul %3, %0, %cst {dimension_numbers = #tpu.dot_dimension_numbers<[2], [1], [1], [2], [0, 0, 0, 1, 1, 2], [0], [0]>} : vector<2x16x16xf32>, vector<2x16x16xf32>, vector<2x16x16xf32> -> vector<2x16x16xf32>
    "tpu.trace_stop"() : () -> ()
    "tpu.trace_start"() <{level = 10 : i32, message = "bhw,bwv->bhv"}> : () -> ()
    %cst_6 = arith.constant dense<0.000000e+00> : vector<2x16x16xf32>
    %8 = tpu.matmul %7, %6, %cst_6 {dimension_numbers = #tpu.dot_dimension_numbers<[2], [1], [1], [2], [0, 0, 0, 1, 1, 2], [0], [0]>} : vector<2x16x16xf32>, vector<2x16x16xf32>, vector<2x16x16xf32> -> vector<2x16x16xf32>
    "tpu.trace_stop"() : () -> ()
    %c0_7 = arith.constant 0 : index
    %c0_8 = arith.constant 0 : index
    %c0_9 = arith.constant 0 : index
    %9 = vector.load %arg4[%c0_7, %c0_8, %c0_9] : memref<2x16x16xf32, #tpu.memory_space<vmem>>, vector<2x16x16xf32>
    tpu.vector_store %arg4[%c0_7, %c0_8, %c0_9], %8 {strides = array<i32>} : memref<2x16x16xf32, #tpu.memory_space<vmem>>, vector<2x16x16xf32>,
    return
  }
  func.func @transform_0(%arg0: i32) -> (i32, i32) {
    %c0_i32 = arith.constant 0 : i32
    %c0_i32_0 = arith.constant 0 : i32
    %c0_i32_1 = arith.constant 0 : i32
    return %c0_i32, %c0_i32_0 : i32, i32
  }
  func.func @transform_1(%arg0: i32) -> (i32, i32) {
    %c0_i32 = arith.constant 0 : i32
    %c0_i32_0 = arith.constant 0 : i32
    %c0_i32_1 = arith.constant 0 : i32
    return %c0_i32, %c0_i32_0 : i32, i32
  }
  func.func @transform_2(%arg0: i32) -> (i32, i32, i32) {
    %c0_i32 = arith.constant 0 : i32
    %c0_i32_0 = arith.constant 0 : i32
    %c0_i32_1 = arith.constant 0 : i32
    return %arg0, %c0_i32, %c0_i32_0 : i32, i32, i32
  }
  func.func @transform_3(%arg0: i32) -> (i32, i32, i32) {
    %c0_i32 = arith.constant 0 : i32
    %c0_i32_0 = arith.constant 0 : i32
    %c0_i32_1 = arith.constant 0 : i32
    return %arg0, %c0_i32, %c0_i32_0 : i32, i32, i32
  }
}

</mosaic_0001>

<bundles_post_ra>
// kernel: tpu_custom_call.1
= control target key start
LH: loop header
LB: loop body
LE: loop exit
PB: predicated region body
PF: predicated region fallthrough
CT: control target
= control target key end

     0   :  { %8 = vsyncpa [#allocation3], 0  ;;  %s921_s0 = inlined_call_operand.hbm [shape: f32[16,16], index: 0, kind: input, shape index: {}]   ;;  %s922_s1 = inlined_call_operand.hbm [shape: f32[16,16], index: 1, kind: input, shape index: {}]   ;;  %s923_s2 = inlined_call_operand.hbm [shape: f32[8,16,16], index: 2, kind: input, shape index: {}]   ;;  %s924_s3 = inlined_call_operand.hbm [shape: f32[8,16,16], index: 3, kind: output, shape index: {}]  }
   0x1   :  { %9 = vsyncpa [#allocation6], 0 }
   0x2   :  { %10 = vsyncpa [#allocation4], 0 }
   0x3   :  { %12 = vsyncpa [#allocation4 + $0x1], 0  ;;  %s752_s12 = smov 0   ;;  %s754_s13 = smov 0  }
   0x4   :  { %s756_s14 = smov 0   ;;  %s758_s15 = smov 0  }
   0x5 LB: > { %s773_s16 = sadd.s32 4294967295, %s724_s15   ;;  %s457_s17 = sadd.s32 4294967294, %s724_s15   ;;  %s724_s15 = sphi %s758_s15, %s933_s15   ;;  %s720_s14 = sphi %s756_s14, %s932_s14   ;;  %s716_s13 = sphi %s754_s13, %s931_s13   ;;  %s712_s12 = sphi %s752_s12, %s930_s12  }
   0x6   : > { %p80_p0 = scmp.ne.s32.totalorder %s716_s13, %s712_s12  ;;  %p81_p1 = scmp.eq.s32.totalorder %s773_s16, 0 }
   0x7   : > { %p104_p2 = scmp.eq.s32.totalorder %s773_s16, 3  ;;  %p110_p3 = scmp.eq.s32.totalorder %s457_s17, 3 }
   0x8   : > { %p782_p4 = por %p81_p1, %p80_p0  ;;  %p458_p5 = scmp.ge.s32.totalorder %s724_s15, 1 }
   0x9   : > { %p787_p6 = por %p110_p3, %p80_p0  ;;  %p117_p7 = scmp.lt.s32.totalorder %s724_s15, 5 }
   0xa   : > { %s128_s22 = sshll.u32 %s921_s0, 4  ;;  %s726_s24 = smov [#allocation2]   ;;  %s129_s22 = int_to_ptr.hbm [resolvable:$true] %s128_s22 }
   0xb   : > { %p795_p8 = pnand %p458_p5, %p117_p7  ;;  %s130_s25 = sshll.u32 %s726_s24, 4  ;;  %s131_s25 = int_to_ptr.vmem [resolvable:$true] %s130_s25 }
   0xc   : > { %s142_s28 = sshll.u32 %s922_s1, 4  ;;  %s727_s29 = smov 128   ;;  %s143_s28 = int_to_ptr.hbm [resolvable:$true] %s142_s28 }
   0xd   : > { %p501_p9 = pneg %p795_p8  ;;  %s728_s30 = smov 8  }
   0xe   : > { %s729_s4 = smov [#allocation5]   ;;  %s813_s6 = sadd.s32 1, %s724_s15  }
   0xf   : > { %p502_p10 = pnand %p501_p9, %p81_p1  ;;  %s144_s5 = sshll.u32 %s729_s4, 4  ;;  %s145_s5 = int_to_ptr.vmem [resolvable:$true] %s144_s5 }
  0x10   : > { %s67_s7 = sadd.s32 1, %s720_s14  ;;  %s64_s8 = ssub.s32 %s724_s15, %s813_s6 }
  0x11   : > { %504 = dma.hbm_to_vmem [thread:$0]  (!%p502_p10), %s129_s22, 256, %s131_s25, [#allocation3], %s727_s29, %s727_s29, %s728_s30  }
  0x12   : > { %507 = dma.hbm_to_vmem [thread:$0]  (!%p502_p10), %s143_s28, 256, %s145_s5, [#allocation6], %s727_s29, %s727_s29, %s728_s30  }
  0x13   : > { %p74_p11 = scmp.ne.s32.totalorder %s720_s14, %s716_s13  ;;  %p65_p12 = scmp.eq.s32.totalorder %s64_s8, 0 }
  0x14   : > { %p75_p13 = scmp.eq.s32.totalorder %s724_s15, 0  ;;  %p518_p5 = scmp.lt.s32.totalorder %s724_s15, 4 }
  0x15   : > { %p823_p0 = por %p104_p2, %p74_p11  ;;  %s158_s11 = sand.u32 1, %s724_s15  }
  0x16   : > { %s828_s10 = scalar_select %p65_p12, %s720_s14, %s67_s7  }
  0x17   : > { %p76_p3 = por %p75_p13, %p74_p11  ;;  %s160_s17 = sand.u32 1, %s720_s14  }
  0x18   : > { %s462_s20 = sshll.u32 %s160_s17, 5  ;;  %s486_s21 = sshll.u32 %s724_s15, 5 }
  0x19   : > { %s168_s25 = scalar_lea.hbm %s923_s2, %s486_s21  ;;  %s162_s27 = scalar_lea.vmem [#allocation7], %s462_s20 }
  0x1a   : > { %s169_s26 = sshll.u32 %s168_s25, 4  ;;  %s171_s28 = sshll.u32 %s162_s27, 4  ;;  %s170_s26 = int_to_ptr.hbm [resolvable:$true] %s169_s26  ;;  %s172_s28 = int_to_ptr.vmem [resolvable:$true] %s171_s28 }
  0x1b   : > { %p837_p2 = pnand %p518_p5, %p76_p3  ;;  %s159_s5 = scalar_lea.sflag [#allocation3], %s158_s11 }
  0x1c   : > { %s620_s7 = sshra.s32 %s170_s26, 4  ;;  %s627_s20 = scalar_lea.hbm %s923_s2, 128  ;;  %s621_s7 = int_to_ptr.hbm [resolvable:$true] %s620_s7 }
  0x1d   : > { %s622_s8 = scalar_lea.hbm %s621_s7, 32  ;;  %p624_p9 = pneg %p837_p2 }
  0x1e   : > { %p623_p7 = scmp.ne.s32.totalorder %s621_s7, %s622_s8  ;;  %p628_p12 = scmp.lt.s32.totalorder %s621_s7, %s923_s2 }
  0x1f   : > { %p629_p13 = scmp.lt.s32.totalorder %s627_s20, %s622_s8 }
  0x20   : > { %p625_p10 = pnand %p624_p9, %p623_p7 }
  0x21   : > { %p630_p3 = por %p629_p13, %p628_p12 }
  0x22   : > { %p626_p11 = pneg %p625_p10 }
  0x24   : > { %p631_p5 = pnand %p630_p3, %p626_p11 }
  0x26   : > { %634 = shalt.err (!%p631_p5)
}
  0x27   : > { %511 = dma.hbm_to_vmem [thread:$0]  (!%p837_p2), %s170_s26, 512, %s172_s28, %s159_s5, %s727_s29, %s727_s29, %s728_s30  }
  0x28   : > { %183 = sbr.rel (%p795_p8) target bundleno = 327 (0x147), region = 32 }
  0x2d   : > { %695 = dma.done.wait (%p81_p1), [#allocation3], 256  }
  0x2e   : > { %697 = vsyncadd (%p81_p1), [#allocation3], 4294967040 }
  0x2f   : > { %699 = dma.done.wait (%p81_p1), [#allocation6], 256  }
  0x30   : > { %701 = vsyncadd (%p81_p1), [#allocation6], 4294967040  ;;  %s195_s29 = sand.u32 1, %s773_s16   ;;  %s197_s30 = sand.u32 1, %s716_s13  }
  0x31   : > { %s868_s23 = sshll.u32 %s197_s30, 5  ;;  %s196_s11 = scalar_lea.sflag [#allocation3], %s195_s29 }
  0x32   : > { %s199_s25 = scalar_lea.vmem [#allocation7], %s868_s23 }
  0x33   : > { %703 = dma.done.wait (%p782_p4), %s196_s11, 512  }
  0x34   : > { %705 = vsyncadd (%p782_p4), %s196_s11, 4294966784  ;;  %v226_v0 = vld [vmem:[%s199_s25 + $0x8] sm:$0xff]  ;;  %v228_v1 = vld [vmem:[%s199_s25 + $0x18] sm:$0xff]  ;;  %vm233_vm0 = vcmask 130048   ;;  %s488_s18 = sshll.u32 %s773_s16, 5  ;;  %s222_s26 = scalar_lea.vmem [#allocation8], %s868_s23 }
  0x35   : > { %v225_v2 = vld [vmem:[%s199_s25] sm:$0xff]  ;;  %254 = vmatpush.msra.mxu0 %v226_v0  ;;  %277 = vmatpush.msra.mxu1 %v228_v1  ;;  %v227_v3 = vld [vmem:[%s199_s25 + $0x10] sm:$0xff]  ;;  %v232_v5 = vld [vmem:[#allocation5 + $0x8] sm:$0xff]  ;;  %s361_s4 = scalar_lea.hbm %s924_s3, %s488_s18  ;;  %s362_s5 = sshll.u32 %s222_s26, 4  ;;  %s363_s5 = int_to_ptr.vmem [resolvable:$true] %s362_s5 }
  0x36   : > { %v229_v4 = vld [vmem:[#allocation2] sm:$0xff]  ;;  %306 = vmatpush.msra.mxu2 %v232_v5  ;;  %335 = vmatpush.msra.mxu3 %v232_v5  ;;  %v230_v6 = vld [vmem:[#allocation2 + $0x8] sm:$0xff]  ;;  %v231_v7 = vld [vmem:[#allocation5] sm:$0xff]  ;;  %s364_s7 = sshll.u32 %s361_s4, 4  ;;  %s349_s16 = scalar_lea.sflag [#allocation4], %s197_s30  ;;  %s365_s7 = int_to_ptr.hbm [resolvable:$true] %s364_s7 }
  0x37   : > { %255 = vmatpush.msra.mxu0 %v225_v2  ;;  %278 = vmatpush.msra.mxu1 %v227_v3  ;;  %s664_s8 = sshra.s32 %s365_s7, 4  ;;  %s670_s22 = scalar_lea.hbm %s924_s3, 128  ;;  %s665_s8 = int_to_ptr.hbm [resolvable:$true] %s664_s8 }
  0x38   : > { %471 = vmatmul.msk.f32.vlgmr.msra.gmra.mxu0 %vm233_vm0, %v229_v4  ;;  %473 = vmatmul.msk.f32.vlgmr.msra.gmra.mxu1 %vm233_vm0, %v229_v4  ;;  %s666_s17 = scalar_lea.hbm %s665_s8, 32  ;;  %p671_p2 = scmp.lt.s32.totalorder %s665_s8, %s924_s3 }
  0x39   : > { %307 = vmatpush.msra.mxu2 %v231_v7  ;;  %336 = vmatpush.msra.mxu3 %v231_v7  ;;  %p667_p1 = scmp.ne.s32.totalorder %s665_s8, %s666_s17  ;;  %p672_p7 = scmp.lt.s32.totalorder %s670_s22, %s666_s17 }
  0x3b   : > { %p668_p4 = pnand %p667_p1, %p823_p0  ;;  %p673_p9 = por %p672_p7, %p671_p2 }
  0x3d   : > { %p669_p8 = pneg %p668_p4 }
  0x3f   : > { %p674_p10 = pnand %p673_p9, %p669_p8 }
  0x40   : > { %472 = vmatmul.msk.f32.gmra.mxu0 %vm233_vm0, %v230_v6  ;;  %474 = vmatmul.msk.f32.gmra.mxu1 %vm233_vm0, %v230_v6 }
  0xb5   : > { %v257_v8 = vpop.f32.mrf.mxu0  ;;  %v280_v9 = vpop.f32.mrf.mxu1 }
  0xb6   : > { %475 = vmatmul.msk.f32.vlgmr.msra.gmra.mxu2 %vm233_vm0, %v257_v8  ;;  %477 = vmatmul.msk.f32.vlgmr.msra.gmra.mxu3 %vm233_vm0, %v280_v9 }
  0xbd   : > { %v260_v10 = vpop.f32.mrf.mxu0  ;;  %v283_v11 = vpop.f32.mrf.mxu1 }
  0xbe   : > { %476 = vmatmul.msk.f32.gmra.mxu2 %vm233_vm0, %v260_v10  ;;  %478 = vmatmul.msk.f32.gmra.mxu3 %vm233_vm0, %v283_v11 }
 0x139   : > { %v309_v12 = vpop.f32.mrf.mxu2  ;;  %v338_v13 = vpop.f32.mrf.mxu3 }
 0x13a   : > { %344 = vst.msk [vmem:[%s222_s26] sm:$0xff] %vm233_vm0, %v309_v12 }
 0x13b   : > { %346 = vst.msk [vmem:[%s222_s26 + $0x10] sm:$0xff] %vm233_vm0, %v338_v13 }
 0x141   : > { %v312_v14 = vpop.f32.mrf.mxu2  ;;  %v341_v15 = vpop.f32.mrf.mxu3 }
 0x142   : > { %345 = vst.msk [vmem:[%s222_s26 + $0x8] sm:$0xff] %vm233_vm0, %v312_v14 }
 0x143   : > { %347 = vst.msk [vmem:[%s222_s26 + $0x18] sm:$0xff] %vm233_vm0, %v341_v15 }
 0x144   : > { %677 = shalt.err (!%p674_p10)
}
 0x145   : > { %s730_s30 = smov 128   ;;  %s731_s23 = smov 8  }
 0x146   : > { %499 = dma.vmem_to_hbm [thread:$0]  (%p823_p0), %s363_s5, 512, %s365_s7, %s349_s16, %s730_s30, %s730_s30, %s731_s23  }
 0x147 PF: > { %p521_p11 = scmp.ge.s32.totalorder %s724_s15, 2  ;;  %s379_s11 = sand.u32 1, %s712_s12  }
 0x148   : > { %s380_s25 = scalar_lea.sflag [#allocation4], %s379_s11 }
 0x149   : > { %p513_p12 = pnand %p521_p11, %p787_p6 }
 0x14b   : > { %p514_p13 = pneg %p513_p12 }
 0x14d   : > { %707 = dma.done.wait (%p514_p13), %s380_s25, 512  }
 0x14e   : > { %709 = vsyncadd (%p514_p13), %s380_s25, 4294966784  ;;  %p15_p3 = scmp.ge.s32.totalorder %s813_s6, 6   ;;  %s930_s12 = smov %s716_s13 }
 0x14f   : > { %s931_s13 = smov %s720_s14  ;;  %s932_s14 = smov %s828_s10 }
 0x150   : > { %s933_s15 = smov %s813_s6  ;;  %17 = sbr.rel (!%p15_p3) target bundleno = 5 (0x5), region = 84 }
 0x155   :  { %386 = vsyncpa [#allocation3], 1 }
 0x156   :  { %388 = vsyncpa [#allocation3 + $0x1], 1 }
 0x157   :  { %389 = vsyncpa [#allocation6], 1 }
 0x158   :  { %390 = vsyncpa [#allocation4], 1 }
 0x159   :  { %392 = vsyncpa [#allocation4 + $0x1], 1 }

</bundles_post_ra>
